<compile_context>
chip_gen: v6e
topology: v6e:2x2x1
jax: 0.10.0
libtpu: 0.0.40
codegen_flags: <defaults>
</compile_context>

<pallas_src>
import jax
import jax.numpy as jnp
from jax import lax
from jax.experimental import pallas as pl
from jax.experimental.pallas import tpu as pltpu


def _round_up(x, m):
    return (x + m - 1) // m * m


def _cdiv(a, b):
    return (a + b - 1) // b


def _pick_tiles(N, H, W, C, Cout, in_itemsize, out_itemsize,
                vmem_budget=18 * 1024 * 1024, min_steps=8):
    """Pick (TS, HB).

    TS = flattened padded spatial rows per grid step (the matmul M dim),
    HB = halo rows (>= 2*Wp + 2, divides TS so the halo block index is exact).
    Accounts for all double-buffered pipeline blocks plus in-kernel temporaries
    so the working set fits v7x's 64 MiB VMEM with margin.
    """
    Wp = W + 2
    sub = 8 if in_itemsize >= 4 else (16 if in_itemsize == 2 else 32)
    HB = _round_up(2 * Wp + 2, sub)
    # lane/sublane-padded sizes for conservative VMEM accounting
    Cl, Col, Cs = _round_up(C, 128), _round_up(Cout, 128), _round_up(C, 8)
    S = H * Wp                               # output rows actually needed per image

    def working_set(ts):
        main = ts * Cl * in_itemsize         # input row block
        halo = HB * Cl * in_itemsize
        outb = ts * Col * out_itemsize
        wts = 9 * Cs * Col * in_itemsize + 8 * 128 * 4      # weights + bias
        slab = (ts + HB) * Cl * in_itemsize                  # VMEM scratch
        tmp = 2 * ts * Cl * in_itemsize + 2 * ts * Col * 4   # shifted loads + f32 acc
        return 2 * (main + halo + outb + wts) + slab + tmp + (64 << 10)

    # Largest multiple of HB, capped by the (rounded) spatial extent and ~4K rows.
    m = max(1, min(_cdiv(S, HB), max(1, 4096 // HB)))
    while m > 1 and working_set(m * HB) > vmem_budget:
        m = max(1, m // 2)
    # Give the software pipeline / both v7x TensorCores enough grid depth, but
    # never shrink below ~256 rows per step (per-step overhead ~0.35us) since the
    # halo read amplification is HB/TS.
    while m > 1 and N * _cdiv(S, m * HB) < min_steps:
        nm = max(1, m // 2)
        if nm == m or nm * HB < 256:
            break
        m = nm
    return m * HB, HB


def _make_conv_kernel(TS, HB, Wp, C, Cout):
    def kernel(xm_ref, xh_ref, w_ref, b_ref, o_ref, slab_ref):
        # Stitch the current row block and its halo into one (TS+HB, C) slab.
        slab_ref[0:TS, :] = xm_ref[...]
        slab_ref[TS:TS + HB, :] = xh_ref[...]
        # 3x3 conv = 9 row-shifted (TS, C) @ (C, Cout) MXU dots, f32 accumulate.
        acc = jnp.zeros((TS, Cout), jnp.float32)
        for dy in range(3):
            for dx in range(3):
                off = dy * Wp + dx                       # static shift in flat (h, w)
                lhs = slab_ref[off:off + TS, :]
                acc = acc + jnp.dot(lhs, w_ref[dy * 3 + dx],
                                    preferred_element_type=jnp.float32)
        o_ref[...] = (acc + b_ref[...]).astype(o_ref.dtype)
    return kernel


def reghead_forward(x_nchw, weight, bias, num_anchors, num_regress,
                    compute_dtype=jnp.bfloat16):
    """x: (N, C, H, W); weight: (Cout, C, 3, 3) PyTorch OIHW; bias: (Cout,)."""
    N, C, H, W = x_nchw.shape
    Cout = num_anchors * num_regress
    assert weight.shape == (Cout, C, 3, 3)

    out_dtype = x_nchw.dtype
    cdtype = out_dtype if compute_dtype is None else compute_dtype
    in_isz = jnp.dtype(cdtype).itemsize
    out_isz = jnp.dtype(out_dtype).itemsize

    Hp, Wp = H + 2, W + 2
    TS, HB = _pick_tiles(N, H, W, C, Cout, in_isz, out_isz)
    m = TS // HB                      # halo block-index multiplier (HB divides TS)
    S = H * Wp                        # valid output rows per image (incl. 2 pad cols/row)
    num_s = _cdiv(S, TS)
    S_pad = num_s * TS
    L = S_pad + HB                    # flattened spatial length fed to the kernel

    # Single ~1x materialization of the padded NHWC feature map, flattened over
    # (padded H, padded W) so in-kernel conv taps become contiguous row shifts.
    x_nhwc = jnp.transpose(x_nchw, (0, 2, 3, 1))                  # (N, H, W, C)
    x_pad = jnp.pad(x_nhwc, ((0, 0), (1, 1), (1, 1), (0, 0)))     # (N, Hp, Wp, C)
    x_flat = x_pad.reshape(N, Hp * Wp, C)
    x_flat = jnp.pad(x_flat, ((0, 0), (0, L - Hp * Wp), (0, 0))).astype(cdtype)

    # Weights: OIHW (Cout, C, 3, 3) -> per-tap (9, C, Cout); bias as (1, Cout) f32.
    w_taps = jnp.transpose(weight, (2, 3, 1, 0)).reshape(9, C, Cout).astype(cdtype)
    b2d = bias.reshape(1, Cout).astype(jnp.float32)

    kernel = _make_conv_kernel(TS, HB, Wp, C, Cout)

    out = pl.pallas_call(
        kernel,
        out_shape=jax.ShapeDtypeStruct((N, S_pad, Cout), out_dtype),
        grid_spec=pltpu.PrefetchScalarGridSpec(
            num_scalar_prefetch=0,
            grid=(N, num_s),
            in_specs=[
                # current block of flattened padded rows
                pl.BlockSpec((None, TS, C), lambda n, s: (n, s, 0)),
                # halo: first HB rows of the *next* block (same HBM array)
                pl.BlockSpec((None, HB, C), lambda n, s: (n, (s + 1) * m, 0)),
                # weights / bias: constant index -> DMA'd into VMEM only once
                pl.BlockSpec((9, C, Cout), lambda n, s: (0, 0, 0)),
                pl.BlockSpec((1, Cout), lambda n, s: (0, 0)),
            ],
            out_specs=pl.BlockSpec((None, TS, Cout), lambda n, s: (n, s, 0)),
            scratch_shapes=[pltpu.VMEM((TS + HB, C), cdtype)],
        ),
        compiler_params=pltpu.CompilerParams(
            dimension_semantics=("parallel", "parallel"),
            vmem_limit_bytes=32 * 1024 * 1024),
    )(x_flat, x_flat, w_taps, b2d)

    # Drop the per-row pad columns / trailing row padding; reshape to (N, H*W*A, R).
    out = out[:, :S, :].reshape(N, H, Wp, num_anchors, num_regress)
    out = out[:, :, :W]
    return out.reshape(N, H * W * num_anchors, num_regress)


if __name__ == "__main__":
    def torch_reference(x, weight, bias, num_regress):
        ref = lax.conv_general_dilated(
            x, weight, window_strides=(1, 1), padding=((1, 1), (1, 1)),
            dimension_numbers=("NCHW", "OIHW", "NCHW"))
        ref = ref + bias[None, :, None, None]
        ref = jnp.transpose(ref, (0, 2, 3, 1))
        return ref.reshape(x.shape[0], -1, num_regress)

    fwd = jax.jit(reghead_forward,
                  static_argnames=("num_anchors", "num_regress", "compute_dtype"))

    key = jax.random.PRNGKey(0)

    # Config A: small, nicely shaped (N=2, C=32, 8x8, A=4, R=4 -> Cout=16).
    N, C, H, W, A, R = 2, 32, 8, 8, 4, 4
    kx, kw = jax.random.split(key)
    x = jax.random.normal(kx, (N, C, H, W), dtype=jnp.float32)
    # mmdet normal_init(mean=0, std=0.01, bias=0), deterministic in-script
    w = 0.01 * jax.random.normal(kw, (A * R, C, 3, 3), dtype=jnp.float32)
    b = jnp.zeros((A * R,), dtype=jnp.float32)
    ref = torch_reference(x, w, b, R)

    out32 = jax.block_until_ready(
        fwd(x, w, b, num_anchors=A, num_regress=R, compute_dtype=jnp.float32))
    assert out32.shape == (N, H * W * A, R)
    assert jnp.allclose(out32, ref, atol=1e-4, rtol=1e-4)

    outbf = jax.block_until_ready(
        fwd(x, w, b, num_anchors=A, num_regress=R))          # bf16 default path
    assert outbf.shape == (N, H * W * A, R)
    assert jnp.allclose(outbf, ref, atol=2e-2, rtol=2e-2)

    # Config B: non-multiple-of-8 spatial dims and Cout=36 -> exercises the cdiv
    # grid, trailing row padding, and the exact-width (not 128-padded) output.
    N2, C2, H2, W2, A2, R2 = 1, 32, 13, 13, 9, 4
    kx2, kw2 = jax.random.split(kw)
    x2 = jax.random.normal(kx2, (N2, C2, H2, W2), dtype=jnp.float32)
    w2 = 0.01 * jax.random.normal(kw2, (A2 * R2, C2, 3, 3), dtype=jnp.float32)
    b2 = 0.1 * jnp.ones((A2 * R2,), dtype=jnp.float32)
    out2 = jax.block_until_ready(
        fwd(x2, w2, b2, num_anchors=A2, num_regress=R2, compute_dtype=jnp.float32))
    ref2 = torch_reference(x2, w2, b2, R2)
    assert out2.shape == (N2, H2 * W2 * A2, R2)
    assert jnp.allclose(out2, ref2, atol=1e-4, rtol=1e-4)

    print("KERNEL_OK")
</pallas_src>

<mosaic_0001>
module attributes {stable_mosaic.version = 11 : i64} {
  func.func @kernel(%arg0: i32, %arg1: i32, %arg2: memref<1x96x32xf32, #tpu.memory_space<vmem>>, %arg3: memref<1x24x32xf32, #tpu.memory_space<vmem>>, %arg4: memref<9x32x16xf32, #tpu.memory_space<vmem>>, %arg5: memref<1x16xf32, #tpu.memory_space<vmem>>, %arg6: memref<1x96x16xf32, #tpu.memory_space<vmem>>, %arg7: memref<120x32xf32, #tpu.memory_space<vmem>>) attributes {dimension_semantics = [#tpu.dimension_semantics<parallel>, #tpu.dimension_semantics<parallel>], iteration_bounds = array<i64: 2, 1>, scalar_prefetch = 0 : i64, scratch_operands = 1 : i64, tpu.core_type = #tpu.core_type<tc>, window_params = [{transform_indices = @transform_0, window_bounds = array<i64: 1, 96, 32>}, {transform_indices = @transform_1, window_bounds = array<i64: 1, 24, 32>}, {pipeline_mode = #tpu.pipeline_mode<synchronous>, transform_indices = @transform_2, window_bounds = array<i64: 9, 32, 16>}, {pipeline_mode = #tpu.pipeline_mode<synchronous>, transform_indices = @transform_3, window_bounds = array<i64: 1, 16>}, {transform_indices = @transform_4, window_bounds = array<i64: 1, 96, 16>}]} {
    %c0 = arith.constant 0 : index
    %c0_0 = arith.constant 0 : index
    %c0_1 = arith.constant 0 : index
    %0 = vector.load %arg2[%c0, %c0_0, %c0_1] : memref<1x96x32xf32, #tpu.memory_space<vmem>>, vector<1x96x32xf32>
    %1 = vector.shape_cast %0 : vector<1x96x32xf32> to vector<96x32xf32>
    %c0_2 = arith.constant 0 : index
    %c0_3 = arith.constant 0 : index
    %2 = vector.load %arg7[%c0_2, %c0_3] : memref<120x32xf32, #tpu.memory_space<vmem>>, vector<96x32xf32>
    tpu.vector_store %arg7[%c0_2, %c0_3], %1 {strides = array<i32>} : memref<120x32xf32, #tpu.memory_space<vmem>>, vector<96x32xf32>,
    %c0_4 = arith.constant 0 : index
    %c0_5 = arith.constant 0 : index
    %c0_6 = arith.constant 0 : index
    %3 = vector.load %arg3[%c0_4, %c0_5, %c0_6] : memref<1x24x32xf32, #tpu.memory_space<vmem>>, vector<1x24x32xf32>
    %4 = vector.shape_cast %3 : vector<1x24x32xf32> to vector<24x32xf32>
    %c96 = arith.constant 96 : index
    %c0_7 = arith.constant 0 : index
    %5 = vector.load %arg7[%c96, %c0_7] : memref<120x32xf32, #tpu.memory_space<vmem>>, vector<24x32xf32>
    tpu.vector_store %arg7[%c96, %c0_7], %4 {strides = array<i32>} : memref<120x32xf32, #tpu.memory_space<vmem>>, vector<24x32xf32>,
    %cst = arith.constant 0.000000e+00 : f32
    %6 = vector.broadcast %cst : f32 to vector<96x16xf32>
    %c0_8 = arith.constant 0 : index
    %c0_9 = arith.constant 0 : index
    %7 = vector.load %arg7[%c0_8, %c0_9] : memref<120x32xf32, #tpu.memory_space<vmem>>, vector<96x32xf32>
    %c0_10 = arith.constant 0 : index
    %c0_11 = arith.constant 0 : index
    %c0_12 = arith.constant 0 : index
    %8 = vector.load %arg4[%c0_10, %c0_11, %c0_12] : memref<9x32x16xf32, #tpu.memory_space<vmem>>, vector<1x32x16xf32>
    %9 = vector.shape_cast %8 : vector<1x32x16xf32> to vector<32x16xf32>
    %cst_13 = arith.constant dense<0.000000e+00> : vector<96x16xf32>
    %10 = tpu.matmul %7, %9, %cst_13 {dimension_numbers = #tpu.dot_dimension_numbers<[1], [0], [0], [1], [0, 0, 1, 1], [], []>} : vector<96x32xf32>, vector<32x16xf32>, vector<96x16xf32> -> vector<96x16xf32>
    %11 = arith.addf %6, %10 : vector<96x16xf32>
    %c1 = arith.constant 1 : index
    %c0_14 = arith.constant 0 : index
    %12 = vector.load %arg7[%c1, %c0_14] : memref<120x32xf32, #tpu.memory_space<vmem>>, vector<96x32xf32>
    %c1_15 = arith.constant 1 : index
    %c0_16 = arith.constant 0 : index
    %c0_17 = arith.constant 0 : index
    %13 = vector.load %arg4[%c1_15, %c0_16, %c0_17] : memref<9x32x16xf32, #tpu.memory_space<vmem>>, vector<1x32x16xf32>
    %14 = vector.shape_cast %13 : vector<1x32x16xf32> to vector<32x16xf32>
    %cst_18 = arith.constant dense<0.000000e+00> : vector<96x16xf32>
    %15 = tpu.matmul %12, %14, %cst_18 {dimension_numbers = #tpu.dot_dimension_numbers<[1], [0], [0], [1], [0, 0, 1, 1], [], []>} : vector<96x32xf32>, vector<32x16xf32>, vector<96x16xf32> -> vector<96x16xf32>
    %16 = arith.addf %11, %15 : vector<96x16xf32>
    %c2 = arith.constant 2 : index
    %c0_19 = arith.constant 0 : index
    %17 = vector.load %arg7[%c2, %c0_19] : memref<120x32xf32, #tpu.memory_space<vmem>>, vector<96x32xf32>
    %c2_20 = arith.constant 2 : index
    %c0_21 = arith.constant 0 : index
    %c0_22 = arith.constant 0 : index
    %18 = vector.load %arg4[%c2_20, %c0_21, %c0_22] : memref<9x32x16xf32, #tpu.memory_space<vmem>>, vector<1x32x16xf32>
    %19 = vector.shape_cast %18 : vector<1x32x16xf32> to vector<32x16xf32>
    %cst_23 = arith.constant dense<0.000000e+00> : vector<96x16xf32>
    %20 = tpu.matmul %17, %19, %cst_23 {dimension_numbers = #tpu.dot_dimension_numbers<[1], [0], [0], [1], [0, 0, 1, 1], [], []>} : vector<96x32xf32>, vector<32x16xf32>, vector<96x16xf32> -> vector<96x16xf32>
    %21 = arith.addf %16, %20 : vector<96x16xf32>
    %c10 = arith.constant 10 : index
    %c0_24 = arith.constant 0 : index
    %22 = vector.load %arg7[%c10, %c0_24] : memref<120x32xf32, #tpu.memory_space<vmem>>, vector<96x32xf32>
    %c3 = arith.constant 3 : index
    %c0_25 = arith.constant 0 : index
    %c0_26 = arith.constant 0 : index
    %23 = vector.load %arg4[%c3, %c0_25, %c0_26] : memref<9x32x16xf32, #tpu.memory_space<vmem>>, vector<1x32x16xf32>
    %24 = vector.shape_cast %23 : vector<1x32x16xf32> to vector<32x16xf32>
    %cst_27 = arith.constant dense<0.000000e+00> : vector<96x16xf32>
    %25 = tpu.matmul %22, %24, %cst_27 {dimension_numbers = #tpu.dot_dimension_numbers<[1], [0], [0], [1], [0, 0, 1, 1], [], []>} : vector<96x32xf32>, vector<32x16xf32>, vector<96x16xf32> -> vector<96x16xf32>
    %26 = arith.addf %21, %25 : vector<96x16xf32>
    %c11 = arith.constant 11 : index
    %c0_28 = arith.constant 0 : index
    %27 = vector.load %arg7[%c11, %c0_28] : memref<120x32xf32, #tpu.memory_space<vmem>>, vector<96x32xf32>
    %c4 = arith.constant 4 : index
    %c0_29 = arith.constant 0 : index
    %c0_30 = arith.constant 0 : index
    %28 = vector.load %arg4[%c4, %c0_29, %c0_30] : memref<9x32x16xf32, #tpu.memory_space<vmem>>, vector<1x32x16xf32>
    %29 = vector.shape_cast %28 : vector<1x32x16xf32> to vector<32x16xf32>
    %cst_31 = arith.constant dense<0.000000e+00> : vector<96x16xf32>
    %30 = tpu.matmul %27, %29, %cst_31 {dimension_numbers = #tpu.dot_dimension_numbers<[1], [0], [0], [1], [0, 0, 1, 1], [], []>} : vector<96x32xf32>, vector<32x16xf32>, vector<96x16xf32> -> vector<96x16xf32>
    %31 = arith.addf %26, %30 : vector<96x16xf32>
    %c12 = arith.constant 12 : index
    %c0_32 = arith.constant 0 : index
    %32 = vector.load %arg7[%c12, %c0_32] : memref<120x32xf32, #tpu.memory_space<vmem>>, vector<96x32xf32>
    %c5 = arith.constant 5 : index
    %c0_33 = arith.constant 0 : index
    %c0_34 = arith.constant 0 : index
    %33 = vector.load %arg4[%c5, %c0_33, %c0_34] : memref<9x32x16xf32, #tpu.memory_space<vmem>>, vector<1x32x16xf32>
    %34 = vector.shape_cast %33 : vector<1x32x16xf32> to vector<32x16xf32>
    %cst_35 = arith.constant dense<0.000000e+00> : vector<96x16xf32>
    %35 = tpu.matmul %32, %34, %cst_35 {dimension_numbers = #tpu.dot_dimension_numbers<[1], [0], [0], [1], [0, 0, 1, 1], [], []>} : vector<96x32xf32>, vector<32x16xf32>, vector<96x16xf32> -> vector<96x16xf32>
    %36 = arith.addf %31, %35 : vector<96x16xf32>
    %c20 = arith.constant 20 : index
    %c0_36 = arith.constant 0 : index
    %37 = vector.load %arg7[%c20, %c0_36] : memref<120x32xf32, #tpu.memory_space<vmem>>, vector<96x32xf32>
    %c6 = arith.constant 6 : index
    %c0_37 = arith.constant 0 : index
    %c0_38 = arith.constant 0 : index
    %38 = vector.load %arg4[%c6, %c0_37, %c0_38] : memref<9x32x16xf32, #tpu.memory_space<vmem>>, vector<1x32x16xf32>
    %39 = vector.shape_cast %38 : vector<1x32x16xf32> to vector<32x16xf32>
    %cst_39 = arith.constant dense<0.000000e+00> : vector<96x16xf32>
    %40 = tpu.matmul %37, %39, %cst_39 {dimension_numbers = #tpu.dot_dimension_numbers<[1], [0], [0], [1], [0, 0, 1, 1], [], []>} : vector<96x32xf32>, vector<32x16xf32>, vector<96x16xf32> -> vector<96x16xf32>
    %41 = arith.addf %36, %40 : vector<96x16xf32>
    %c21 = arith.constant 21 : index
    %c0_40 = arith.constant 0 : index
    %42 = vector.load %arg7[%c21, %c0_40] : memref<120x32xf32, #tpu.memory_space<vmem>>, vector<96x32xf32>
    %c7 = arith.constant 7 : index
    %c0_41 = arith.constant 0 : index
    %c0_42 = arith.constant 0 : index
    %43 = vector.load %arg4[%c7, %c0_41, %c0_42] : memref<9x32x16xf32, #tpu.memory_space<vmem>>, vector<1x32x16xf32>
    %44 = vector.shape_cast %43 : vector<1x32x16xf32> to vector<32x16xf32>
    %cst_43 = arith.constant dense<0.000000e+00> : vector<96x16xf32>
    %45 = tpu.matmul %42, %44, %cst_43 {dimension_numbers = #tpu.dot_dimension_numbers<[1], [0], [0], [1], [0, 0, 1, 1], [], []>} : vector<96x32xf32>, vector<32x16xf32>, vector<96x16xf32> -> vector<96x16xf32>
    %46 = arith.addf %41, %45 : vector<96x16xf32>
    %c22 = arith.constant 22 : index
    %c0_44 = arith.constant 0 : index
    %47 = vector.load %arg7[%c22, %c0_44] : memref<120x32xf32, #tpu.memory_space<vmem>>, vector<96x32xf32>
    %c8 = arith.constant 8 : index
    %c0_45 = arith.constant 0 : index
    %c0_46 = arith.constant 0 : index
    %48 = vector.load %arg4[%c8, %c0_45, %c0_46] : memref<9x32x16xf32, #tpu.memory_space<vmem>>, vector<1x32x16xf32>
    %49 = vector.shape_cast %48 : vector<1x32x16xf32> to vector<32x16xf32>
    %cst_47 = arith.constant dense<0.000000e+00> : vector<96x16xf32>
    %50 = tpu.matmul %47, %49, %cst_47 {dimension_numbers = #tpu.dot_dimension_numbers<[1], [0], [0], [1], [0, 0, 1, 1], [], []>} : vector<96x32xf32>, vector<32x16xf32>, vector<96x16xf32> -> vector<96x16xf32>
    %51 = arith.addf %46, %50 : vector<96x16xf32>
    %c0_48 = arith.constant 0 : index
    %c0_49 = arith.constant 0 : index
    %52 = vector.load %arg5[%c0_48, %c0_49] : memref<1x16xf32, #tpu.memory_space<vmem>>, vector<1x16xf32>
    %53 = vector.broadcast %52 : vector<1x16xf32> to vector<96x16xf32>
    %54 = arith.addf %51, %53 : vector<96x16xf32>
    %c0_50 = arith.constant 0 : index
    %c0_51 = arith.constant 0 : index
    %c0_52 = arith.constant 0 : index
    %55 = vector.load %arg6[%c0_50, %c0_51, %c0_52] : memref<1x96x16xf32, #tpu.memory_space<vmem>>, vector<1x96x16xf32>
    %56 = vector.shape_cast %55 : vector<1x96x16xf32> to vector<96x16xf32>
    %57 = vector.shape_cast %54 : vector<96x16xf32> to vector<1x96x16xf32>
    tpu.vector_store %arg6[%c0_50, %c0_51, %c0_52], %57 {strides = array<i32>} : memref<1x96x16xf32, #tpu.memory_space<vmem>>, vector<1x96x16xf32>,
    return
  }
  func.func @transform_0(%arg0: i32, %arg1: i32) -> (i32, i32, i32) {
    %c0_i32 = arith.constant 0 : i32
    %c0_i32_0 = arith.constant 0 : i32
    return %arg0, %arg1, %c0_i32 : i32, i32, i32
  }
  func.func @transform_1(%arg0: i32, %arg1: i32) -> (i32, i32, i32) {
    %c1_i32 = arith.constant 1 : i32
    %0 = arith.addi %arg1, %c1_i32 : i32
    %c4_i32 = arith.constant 4 : i32
    %1 = arith.muli %0, %c4_i32 : i32
    %c0_i32 = arith.constant 0 : i32
    %c0_i32_0 = arith.constant 0 : i32
    return %arg0, %1, %c0_i32 : i32, i32, i32
  }
  func.func @transform_2(%arg0: i32, %arg1: i32) -> (i32, i32, i32) {
    %c0_i32 = arith.constant 0 : i32
    %c0_i32_0 = arith.constant 0 : i32
    %c0_i32_1 = arith.constant 0 : i32
    %c0_i32_2 = arith.constant 0 : i32
    return %c0_i32, %c0_i32_0, %c0_i32_1 : i32, i32, i32
  }
  func.func @transform_3(%arg0: i32, %arg1: i32) -> (i32, i32) {
    %c0_i32 = arith.constant 0 : i32
    %c0_i32_0 = arith.constant 0 : i32
    %c0_i32_1 = arith.constant 0 : i32
    return %c0_i32, %c0_i32_0 : i32, i32
  }
  func.func @transform_4(%arg0: i32, %arg1: i32) -> (i32, i32, i32) {
    %c0_i32 = arith.constant 0 : i32
    %c0_i32_0 = arith.constant 0 : i32
    return %arg0, %arg1, %c0_i32 : i32, i32, i32
  }
}

</mosaic_0001>

<bundles_post_ra>
// kernel: reghead_forward.1
= control target key start
LH: loop header
LB: loop body
LE: loop exit
PB: predicated region body
PF: predicated region fallthrough
CT: control target
= control target key end

     0   :  { %s2776_s15 = smov 0   ;;  %s2778_s16 = smov 0   ;;  %s3334_s0 = inlined_call_operand.vmem [shape: f32[2,120,32], index: 0, kind: input, shape index: {}, may-alias: {0,1}]   ;;  %s3335_s1 = inlined_call_operand.vmem [shape: f32[2,120,32], index: 1, kind: input, shape index: {}, may-alias: {0,1}]   ;;  %s3336_s2 = inlined_call_operand.vmem [shape: f32[9,32,16], index: 2, kind: input, shape index: {}]   ;;  %s3337_s3 = inlined_call_operand.vmem [shape: f32[1,16], index: 3, kind: input, shape index: {}]   ;;  %s3338_s4 = inlined_call_operand.vmem [shape: f32[2,96,16], index: 4, kind: output, shape index: {}]  }
   0x1   :  { %s2780_s17 = smov 0  }
   0x2 LB: > { %s26_s18 = sadd.s32 1, %s2745_s16  ;;  %p2164_p0 = scmp.ge.s32.totalorder %s2749_s17, 1  ;;  %s2749_s17 = sphi %s2780_s17, %s14_s17   ;;  %s2745_s16 = sphi %s2778_s16, %s3374_s16   ;;  %s2741_s15 = sphi %s2776_s15, %s3373_s15  }
   0x3   : > { %p28_p1 = scmp.ge.s32.totalorder %s26_s18, 2  ;;  %p216_p2 = scmp.lt.s32.totalorder %s2749_s17, 3 }
   0x5   : > { %s3376_s18 = smov (%p28_p1, %s26_s18), 0  ;;  %p217_p3 = pnand %p2164_p0, %p216_p2 }
   0x7   : > { %220 = sbr.rel (%p217_p3) target bundleno = 336 (0x150), region = 36 }
   0xc   : > { %v2171_v0 = vld [vmem:[%s3336_s2 + $0x38] sm:$0xff]  ;;  %v2170_v1 = vld [vmem:[%s3336_s2 + $0x30] sm:$0xff]  ;;  %p270_p4 = scmp.lt.s32.totalorder %s2741_s15, 1  ;;  %v2169_v2 = vld [vmem:[%s3336_s2 + $0x28] sm:$0xff]  ;;  %vm319_vm0 = vcmask 261120   ;;  %vm2042_vm1 = vcmask 130048  }
   0xd   : > { %2691 = vmatprep.subr.mxu1 %v2171_v0  ;;  %2457 = vmatprep.subr.mxu0 %v2171_v0  ;;  %v2168_v3 = vld [vmem:[%s3336_s2 + $0x20] sm:$0xff]  ;;  %v353_v4 = vld [vmem:[%s3336_s2 + $0x18] sm:$0xff]  ;;  %v352_v24 = vld [vmem:[%s3336_s2 + $0x10] sm:$0xff] }
   0xe   : > { %2695 = vmatpush3.msra.mxu1 %v2171_v0  ;;  %2458 = vmatpush3.msra.mxu0 %v2171_v0  ;;  %s3378_s15 = smov (!%p270_p4, %s2741_s15), 1  ;;  %v2199_v5 = vld [vmem:[%s3336_s2 + $0x58] sm:$0xff]  ;;  %v2198_v29 = vld [vmem:[%s3336_s2 + $0x50] sm:$0xff]  ;;  %v351_v30 = vld [vmem:[%s3336_s2 + $0x8] sm:$0xff] }
   0xf   : > { %2692 = vmatprep.subr.mxu1 %v2170_v1  ;;  %2459 = vmatprep.subr.mxu0 %v2170_v1  ;;  %s2699_s27 = smul.u32 120, %s3378_s15  ;;  %v2197_v33 = vld [vmem:[%s3336_s2 + $0x48] sm:$0xff]  ;;  %v350_v36 = vld [vmem:[%s3336_s2] sm:$0xff]  ;;  %v2215_v40 = vld [vmem:[%s3336_s2 + $0x78] sm:$0xff] }
  0x10   : > { %2696 = vmatpush3.msra.mxu1 %v2170_v1  ;;  %2460 = vmatpush3.msra.mxu0 %v2170_v1  ;;  %v2196_v37 = vld [vmem:[%s3336_s2 + $0x40] sm:$0xff]  ;;  %v2231_v43 = vld [vmem:[%s3336_s2 + $0x98] sm:$0xff]  ;;  %v2214_v46 = vld [vmem:[%s3336_s2 + $0x70] sm:$0xff]  ;;  %s2701_s7 = smul.u32 96, %s3378_s15 }
  0x11   : > { %2693 = vmatprep.subr.mxu1 %v2169_v2  ;;  %2461 = vmatprep.subr.mxu0 %v2169_v2  ;;  %s2812_s30 = scalar_lea.vmem %s3334_s0, %s2699_s27  ;;  %s2312_s9 = sadd.s32 96, %s2699_s27  ;;  %v2230_v51 = vld [vmem:[%s3336_s2 + $0x90] sm:$0xff]  ;;  %v2213_v52 = vld [vmem:[%s3336_s2 + $0x68] sm:$0xff]  ;;  %v2212_v59 = vld [vmem:[%s3336_s2 + $0x60] sm:$0xff] }
  0x12   : > { %2697 = vmatpush3.msra.mxu1 %v2169_v2  ;;  %2462 = vmatpush3.msra.mxu0 %v2169_v2  ;;  %v307_v6 = vld [vmem:[%s2812_s30] sm:$0xff]  ;;  %v308_v7 = vld [vmem:[%s2812_s30 + $0x8] sm:$0xff]  ;;  %v313_v8 = vld [vmem:[%s2812_s30 + $0x30] sm:$0xff]  ;;  %s2832_s12 = scalar_lea.vmem %s3335_s1, %s2312_s9  ;;  %s3262_s11 = scalar_lea.vmem %s3338_s4, %s2701_s7 }
  0x13   : > { %2694 = vmatprep.subr.mxu1 %v2168_v3  ;;  %2463 = vmatprep.subr.mxu0 %v2168_v3  ;;  %320 = vst.msk [vmem:[#allocation2] sm:$0xff] %vm319_vm0, %v307_v6  ;;  %321 = vst.msk [vmem:[#allocation2 + $0x8] sm:$0xff] %vm319_vm0, %v308_v7  ;;  %v314_v9 = vld [vmem:[%s2812_s30 + $0x38] sm:$0xff]  ;;  %v309_v10 = vld [vmem:[%s2812_s30 + $0x10] sm:$0xff] }
  0x14   : > { %2698 = vmatpush3.msra.mxu1 %v2168_v3  ;;  %2464 = vmatpush3.msra.mxu0 %v2168_v3  ;;  %326 = vst.msk [vmem:[#allocation2 + $0x30] sm:$0xff] %vm319_vm0, %v313_v8  ;;  %v315_v11 = vld [vmem:[%s2812_s30 + $0x40] sm:$0xff]  ;;  %327 = vst.msk [vmem:[#allocation2 + $0x38] sm:$0xff] %vm319_vm0, %v314_v9  ;;  %v310_v12 = vld [vmem:[%s2812_s30 + $0x18] sm:$0xff] }
  0x15   : > { %2483 = vmatprep.subr.mxu1 %v353_v4  ;;  %322 = vst.msk [vmem:[#allocation2 + $0x10] sm:$0xff] %vm319_vm0, %v309_v10  ;;  %328 = vst.msk [vmem:[#allocation2 + $0x40] sm:$0xff] %vm319_vm0, %v315_v11  ;;  %2509 = vmatprep.subr.mxu0 %v2199_v5  ;;  %v316_v13 = vld [vmem:[%s2812_s30 + $0x48] sm:$0xff]  ;;  %v311_v14 = vld [vmem:[%s2812_s30 + $0x20] sm:$0xff] }
  0x16   : > { %323 = vst.msk [vmem:[#allocation2 + $0x18] sm:$0xff] %vm319_vm0, %v310_v12  ;;  %329 = vst.msk [vmem:[#allocation2 + $0x48] sm:$0xff] %vm319_vm0, %v316_v13  ;;  %v317_v15 = vld [vmem:[%s2812_s30 + $0x50] sm:$0xff]  ;;  %v312_v16 = vld [vmem:[%s2812_s30 + $0x28] sm:$0xff] }
  0x17   : > { %324 = vst.msk [vmem:[#allocation2 + $0x20] sm:$0xff] %vm319_vm0, %v311_v14  ;;  %v318_v17 = vld [vmem:[%s2812_s30 + $0x58] sm:$0xff]  ;;  %330 = vst.msk [vmem:[#allocation2 + $0x50] sm:$0xff] %vm319_vm0, %v317_v15  ;;  %v332_v18 = vld [vmem:[%s2832_s12] sm:$0xff] }
  0x18   : > { %325 = vst.msk [vmem:[#allocation2 + $0x28] sm:$0xff] %vm319_vm0, %v312_v16  ;;  %331 = vst.msk [vmem:[#allocation2 + $0x58] sm:$0xff] %vm319_vm0, %v318_v17  ;;  %v333_v19 = vld [vmem:[%s2832_s12 + $0x8] sm:$0xff]  ;;  %v334_v57 = vld [vmem:[%s2832_s12 + $0x10] sm:$0xff] }
  0x19   : > { %335 = vst.msk [vmem:[#allocation2 + $0x60] sm:$0xff] %vm319_vm0, %v332_v18  ;;  %336 = vst.msk [vmem:[#allocation2 + $0x68] sm:$0xff] %vm319_vm0, %v333_v19  ;;  %v2229_v58 = vld [vmem:[%s3336_s2 + $0x88] sm:$0xff]  ;;  %v2228_v0 = vld [vmem:[%s3336_s2 + $0x80] sm:$0xff] }
  0x1a   : > { %v354_v20 = vld [vmem:[#allocation2 + $0x1] sm:$0xff]  ;;  %337 = vst.msk [vmem:[#allocation2 + $0x70] sm:$0xff] %vm319_vm0, %v334_v57  ;;  %v2247_v1 = vld [vmem:[%s3336_s2 + $0xb8] sm:$0xff]  ;;  %v2246_v12 = vld [vmem:[%s3336_s2 + $0xb0] sm:$0xff] }
  0x1b   : > { %2465 = vmatprep.mubr.msk.f32.mxu0 %vm319_vm0, %v354_v20  ;;  %v360_v21 = vld [vmem:[#allocation2 + $0x31] sm:$0xff]  ;;  %v338_v38 = vld [vmem:[#allocation2] sm:$0xff]  ;;  %v339_v41 = vld [vmem:[#allocation2 + $0x8] sm:$0xff] }
  0x1c   : > { %v355_v22 = vld [vmem:[#allocation2 + $0x9] sm:$0xff]  ;;  %v361_v23 = vld [vmem:[#allocation2 + $0x39] sm:$0xff]  ;;  %2474 = vmatprep.mubr.msk.f32.mxu1 %vm319_vm0, %v360_v21 }
  0x1d   : > { %2466 = vmatmul.mubr.msk.f32.vlgmr.msra.gmra.mxu0 %vm319_vm0, %v355_v22  ;;  %v356_v25 = vld [vmem:[#allocation2 + $0x11] sm:$0xff]  ;;  %v362_v26 = vld [vmem:[#allocation2 + $0x41] sm:$0xff]  ;;  %2475 = vmatmul.mubr.msk.f32.vlgmr.msra.gmra.mxu1 %vm319_vm0, %v361_v23 }
  0x1e   : > { %2510 = vmatpush3.msra.mxu0 %v2199_v5  ;;  %v357_v27 = vld [vmem:[#allocation2 + $0x19] sm:$0xff]  ;;  %2484 = vmatpush3.msra.mxu1 %v353_v4  ;;  %v363_v28 = vld [vmem:[#allocation2 + $0x49] sm:$0xff] }
  0x1f   : > { %2468 = vmatprep.mubr.msk.f32.mxu0 %vm319_vm0, %v356_v25  ;;  %2485 = vmatprep.subr.mxu1 %v352_v24  ;;  %v358_v31 = vld [vmem:[#allocation2 + $0x21] sm:$0xff]  ;;  %v364_v32 = vld [vmem:[#allocation2 + $0x51] sm:$0xff]  ;;  %v359_v34 = vld [vmem:[#allocation2 + $0x29] sm:$0xff] }
  0x20   : > { %2477 = vmatprep.mubr.msk.f32.mxu1 %vm319_vm0, %v362_v26  ;;  %2486 = vmatpush3.msra.mxu1 %v352_v24  ;;  %v365_v35 = vld [vmem:[#allocation2 + $0x59] sm:$0xff]  ;;  %v693_v39 = vld [vmem:[#allocation2 + $0x2] sm:$0xff]  ;;  %v2886_v42 = vld [vmem:[#allocation2 + $0xa] sm:$0xff] }
  0x21   : > { %2469 = vmatmul.mubr.msk.f32.gmra.mxu0 %vm319_vm0, %v357_v27  ;;  %2478 = vmatmul.mubr.msk.f32.gmra.mxu1 %vm319_vm0, %v363_v28  ;;  %v340_v44 = vld [vmem:[#allocation2 + $0x10] sm:$0xff]  ;;  %v341_v47 = vld [vmem:[#allocation2 + $0x18] sm:$0xff]  ;;  %v342_v49 = vld [vmem:[#allocation2 + $0x20] sm:$0xff] }
  0x22   : > { %2511 = vmatprep.subr.mxu0 %v2198_v29  ;;  %2487 = vmatprep.subr.mxu1 %v351_v30  ;;  %v2896_v45 = vld [vmem:[#allocation2 + $0x12] sm:$0xff]  ;;  %v2901_v48 = vld [vmem:[#allocation2 + $0x1a] sm:$0xff]  ;;  %v2906_v50 = vld [vmem:[#allocation2 + $0x22] sm:$0xff] }
  0x23   : > { %2512 = vmatpush3.msra.mxu0 %v2198_v29  ;;  %2488 = vmatpush3.msra.mxu1 %v351_v30  ;;  %v343_v53 = vld [vmem:[#allocation2 + $0x28] sm:$0xff]  ;;  %v344_v55 = vld [vmem:[#allocation2 + $0x30] sm:$0xff]  ;;  %v345_v60 = vld [vmem:[#allocation2 + $0x38] sm:$0xff] }
  0x24   : > { %2471 = vmatprep.mubr.msk.f32.mxu0 %vm319_vm0, %v358_v31  ;;  %2480 = vmatprep.mubr.msk.f32.mxu1 %vm319_vm0, %v364_v32  ;;  %v2918_v54 = vld [vmem:[#allocation2 + $0x2a] sm:$0xff]  ;;  %v2922_v56 = vld [vmem:[#allocation2 + $0x32] sm:$0xff]  ;;  %v2938_v61 = vld [vmem:[#allocation2 + $0x3a] sm:$0xff] }
  0x25   : > { %2513 = vmatprep.subr.mxu0 %v2197_v33  ;;  %2472 = vmatmul.mubr.msk.f32.gmra.mxu0 %vm319_vm0, %v359_v34  ;;  %v346_v62 = vld [vmem:[#allocation2 + $0x40] sm:$0xff]  ;;  %v347_v2 = vld [vmem:[#allocation2 + $0x48] sm:$0xff]  ;;  %v348_v4 = vld [vmem:[#allocation2 + $0x50] sm:$0xff] }
  0x26   : > { %2481 = vmatmul.mubr.msk.f32.gmra.mxu1 %vm319_vm0, %v365_v35  ;;  %2489 = vmatprep.subr.mxu1 %v350_v36  ;;  %v2940_v63 = vld [vmem:[#allocation2 + $0x42] sm:$0xff]  ;;  %v702_v3 = vld [vmem:[#allocation2 + $0x4a] sm:$0xff]  ;;  %v2954_v5 = vld [vmem:[#allocation2 + $0x52] sm:$0xff] }
  0x27   : > { %2514 = vmatpush3.msra.mxu0 %v2197_v33  ;;  %2490 = vmatpush3.msra.mxu1 %v350_v36  ;;  %v2263_v6 = vld [vmem:[%s3336_s2 + $0xd8] sm:$0xff]  ;;  %v1073_v9 = vld [vmem:[#allocation2 + $0xb] sm:$0xff]  ;;  %v1076_v14 = vld [vmem:[#allocation2 + $0x23] sm:$0xff] }
  0x28   : > { %2515 = vmatprep.subr.mxu0 %v2196_v37  ;;  %2491 = vmatprep.mubr.msk.f32.mxu1 %vm319_vm0, %v338_v38  ;;  %v349_v7 = vld [vmem:[#allocation2 + $0x58] sm:$0xff]  ;;  %v2262_v13 = vld [vmem:[%s3336_s2 + $0xd0] sm:$0xff]  ;;  %v2245_v16 = vld [vmem:[%s3336_s2 + $0xa8] sm:$0xff] }
  0x29   : > { %2516 = vmatpush3.msra.mxu0 %v2196_v37  ;;  %2517 = vmatprep.mubr.msk.f32.mxu0 %vm319_vm0, %v693_v39  ;;  %v704_v8 = vld [vmem:[#allocation2 + $0x5a] sm:$0xff]  ;;  %v1077_v15 = vld [vmem:[#allocation2 + $0x2b] sm:$0xff]  ;;  %v1080_v22 = vld [vmem:[#allocation2 + $0x43] sm:$0xff] }
  0x2a   : > { %2535 = vmatprep.subr.mxu1 %v2215_v40  ;;  %2492 = vmatmul.mubr.msk.f32.vlgmr.msra.gmra.mxu1 %vm319_vm0, %v339_v41  ;;  %v1074_v10 = vld [vmem:[#allocation2 + $0x13] sm:$0xff]  ;;  %v1075_v11 = vld [vmem:[#allocation2 + $0x1b] sm:$0xff]  ;;  %v2261_v17 = vld [vmem:[%s3336_s2 + $0xc8] sm:$0xff] }
  0x2b   : > { %2518 = vmatmul.mubr.msk.f32.vlgmr.msra.gmra.mxu0 %vm319_vm0, %v2886_v42  ;;  %2536 = vmatpush3.msra.mxu1 %v2215_v40  ;;  %v1078_v18 = vld [vmem:[#allocation2 + $0x33] sm:$0xff]  ;;  %v1079_v19 = vld [vmem:[#allocation2 + $0x3b] sm:$0xff]  ;;  %v1081_v23 = vld [vmem:[#allocation2 + $0x4b] sm:$0xff] }
  0x2c   : > { %2561 = vmatprep.subr.mxu0 %v2231_v43  ;;  %2494 = vmatprep.mubr.msk.f32.mxu1 %vm319_vm0, %v340_v44  ;;  %v2244_v20 = vld [vmem:[%s3336_s2 + $0xa0] sm:$0xff]  ;;  %v2279_v24 = vld [vmem:[%s3336_s2 + $0xf8] sm:$0xff]  ;;  %v1263_v30 = vld [vmem:[#allocation2 + $0xc] sm:$0xff] }
  0x2d   : > { %2562 = vmatpush3.msra.mxu0 %v2231_v43  ;;  %2520 = vmatprep.mubr.msk.f32.mxu0 %vm319_vm0, %v2896_v45  ;;  %v2260_v21 = vld [vmem:[%s3336_s2 + $0xc0] sm:$0xff]  ;;  %v2295_v25 = vld [vmem:[%s3336_s2 + $0x118] sm:$0xff]  ;;  %v2278_v34 = vld [vmem:[%s3336_s2 + $0xf0] sm:$0xff] }
  0x2e   : > { %2537 = vmatprep.subr.mxu1 %v2214_v46  ;;  %2495 = vmatmul.mubr.msk.f32.gmra.mxu1 %vm319_vm0, %v341_v47  ;;  %v1082_v26 = vld [vmem:[#allocation2 + $0x53] sm:$0xff]  ;;  %v1083_v27 = vld [vmem:[#allocation2 + $0x5b] sm:$0xff]  ;;  %v1084_v29 = vld [vmem:[#allocation2 + $0x63] sm:$0xff] }
  0x2f   : > { %2521 = vmatmul.mubr.msk.f32.gmra.mxu0 %vm319_vm0, %v2901_v48  ;;  %2538 = vmatpush3.msra.mxu1 %v2214_v46  ;;  %v894_v28 = vld [vmem:[#allocation2 + $0x62] sm:$0xff]  ;;  %v1453_v31 = vld [vmem:[#allocation2 + $0x14] sm:$0xff]  ;;  %v1456_v36 = vld [vmem:[#allocation2 + $0x2c] sm:$0xff] }
  0x30   : > { %2497 = vmatprep.mubr.msk.f32.mxu1 %vm319_vm0, %v342_v49  ;;  %2523 = vmatprep.mubr.msk.f32.mxu0 %vm319_vm0, %v2906_v50  ;;  %v1454_v32 = vld [vmem:[#allocation2 + $0x1c] sm:$0xff]  ;;  %v1455_v33 = vld [vmem:[#allocation2 + $0x24] sm:$0xff]  ;;  %v2294_v35 = vld [vmem:[%s3336_s2 + $0x110] sm:$0xff] }
  0x31   : > { %2563 = vmatprep.subr.mxu0 %v2230_v51  ;;  %2539 = vmatprep.subr.mxu1 %v2213_v52  ;;  %v1457_v37 = vld [vmem:[#allocation2 + $0x34] sm:$0xff]  ;;  %v2277_v38 = vld [vmem:[%s3336_s2 + $0xe8] sm:$0xff]  ;;  %v1458_v40 = vld [vmem:[#allocation2 + $0x3c] sm:$0xff] }
  0x32   : > { %2564 = vmatpush3.msra.mxu0 %v2230_v51  ;;  %2498 = vmatmul.mubr.msk.f32.gmra.mxu1 %vm319_vm0, %v343_v53  ;;  %v2293_v39 = vld [vmem:[%s3336_s2 + $0x108] sm:$0xff]  ;;  %v2292_v43 = vld [vmem:[%s3336_s2 + $0x100] sm:$0xff]  ;;  %v1643_v49 = vld [vmem:[#allocation2 + $0x15] sm:$0xff] }
  0x33   : > { %2524 = vmatmul.mubr.msk.f32.gmra.mxu0 %vm319_vm0, %v2918_v54  ;;  %2500 = vmatprep.mubr.msk.f32.mxu1 %vm319_vm0, %v344_v55  ;;  %v1459_v41 = vld [vmem:[#allocation2 + $0x44] sm:$0xff]  ;;  %v1460_v44 = vld [vmem:[#allocation2 + $0x4c] sm:$0xff]  ;;  %v1462_v46 = vld [vmem:[#allocation2 + $0x5c] sm:$0xff] }
  0x34   : > { %2526 = vmatprep.mubr.msk.f32.mxu0 %vm319_vm0, %v2922_v56  ;;  %2540 = vmatpush3.msra.mxu1 %v2213_v52  ;;  %v1463_v47 = vld [vmem:[#allocation2 + $0x64] sm:$0xff]  ;;  %v1646_v55 = vld [vmem:[#allocation2 + $0x2d] sm:$0xff]  ;;  %v1647_v57 = vld [vmem:[#allocation2 + $0x35] sm:$0xff] }
  0x35   : > { %2565 = vmatprep.subr.mxu0 %v2229_v58  ;;  %2541 = vmatprep.subr.mxu1 %v2212_v59  ;;  %v1644_v51 = vld [vmem:[#allocation2 + $0x1d] sm:$0xff]  ;;  %v1645_v53 = vld [vmem:[#allocation2 + $0x25] sm:$0xff] }
  0x36   : > { %2566 = vmatpush3.msra.mxu0 %v2229_v58  ;;  %2501 = vmatmul.mubr.msk.f32.gmra.mxu1 %vm319_vm0, %v345_v60  ;;  %v1834_v52 = vld [vmem:[#allocation2 + $0x1e] sm:$0xff]  ;;  %v1837_v58 = vld [vmem:[#allocation2 + $0x36] sm:$0xff] }
  0x37   : > { %2527 = vmatmul.mubr.msk.f32.gmra.mxu0 %vm319_vm0, %v2938_v61  ;;  %2503 = vmatprep.mubr.msk.f32.mxu1 %vm319_vm0, %v346_v62  ;;  %v1838_v60 = vld [vmem:[#allocation2 + $0x3e] sm:$0xff]  ;;  %v1839_v62 = vld [vmem:[#allocation2 + $0x46] sm:$0xff] }
  0x38   : > { %2529 = vmatprep.mubr.msk.f32.mxu0 %vm319_vm0, %v2940_v63  ;;  %2542 = vmatpush3.msra.mxu1 %v2212_v59  ;;  %v1648_v59 = vld [vmem:[#allocation2 + $0x3d] sm:$0xff] }
  0x39   : > { %2567 = vmatprep.subr.mxu0 %v2228_v0  ;;  %2587 = vmatprep.subr.mxu1 %v2247_v1 }
  0x3a   : > { %2568 = vmatpush3.msra.mxu0 %v2228_v0  ;;  %2504 = vmatmul.mubr.msk.f32.gmra.mxu1 %vm319_vm0, %v347_v2  ;;  %v1840_v0 = vld [vmem:[#allocation2 + $0x4e] sm:$0xff]  ;;  %v1841_v2 = vld [vmem:[#allocation2 + $0x56] sm:$0xff] }
  0x3b   : > { %2530 = vmatmul.mubr.msk.f32.gmra.mxu0 %vm319_vm0, %v702_v3  ;;  %2506 = vmatprep.mubr.msk.f32.mxu1 %vm319_vm0, %v348_v4  ;;  %v1842_v4 = vld [vmem:[#allocation2 + $0x5e] sm:$0xff] }
  0x3c   : > { %2532 = vmatprep.mubr.msk.f32.mxu0 %vm319_vm0, %v2954_v5  ;;  %2613 = vmatprep.subr.mxu0 %v2263_v6 }
  0x3e   : > { %2507 = vmatmul.mubr.msk.f32.gmra.mxu1 %vm319_vm0, %v349_v7  ;;  %v1654_v7 = vld [vmem:[#allocation2 + $0x6d] sm:$0xff] }
  0x3f   : > { %2533 = vmatmul.mubr.msk.f32.gmra.mxu0 %vm319_vm0, %v704_v8  ;;  %2543 = vmatprep.mubr.msk.f32.mxu1 %vm319_vm0, %v2886_v42  ;;  %v2276_v42 = vld [vmem:[%s3336_s2 + $0xe0] sm:$0xff] }
  0x40   : > { %2569 = vmatprep.mubr.msk.f32.mxu0 %vm319_vm0, %v1073_v9 }
  0x42   : > { %2544 = vmatmul.mubr.msk.f32.vlgmr.msra.gmra.mxu1 %vm319_vm0, %v2896_v45  ;;  %v1461_v45 = vld [vmem:[#allocation2 + $0x54] sm:$0xff] }
  0x43   : > { %2570 = vmatmul.mubr.msk.f32.vlgmr.msra.gmra.mxu0 %vm319_vm0, %v1074_v10  ;;  %2588 = vmatpush3.msra.mxu1 %v2247_v1  ;;  %v1651_v1 = vld [vmem:[#allocation2 + $0x55] sm:$0xff] }
  0x44   : > { %2614 = vmatpush3.msra.mxu0 %v2263_v6  ;;  %2546 = vmatprep.mubr.msk.f32.mxu1 %vm319_vm0, %v2901_v48  ;;  %v1464_v48 = vld [vmem:[#allocation2 + $0x6c] sm:$0xff] }
  0x45   : > { %2572 = vmatprep.mubr.msk.f32.mxu0 %vm319_vm0, %v1075_v11  ;;  %2589 = vmatprep.subr.mxu1 %v2246_v12  ;;  %v1843_v6 = vld [vmem:[#allocation2 + $0x66] sm:$0xff] }
  0x46   : > { %2615 = vmatprep.subr.mxu0 %v2262_v13  ;;  %2547 = vmatmul.mubr.msk.f32.gmra.mxu1 %vm319_vm0, %v2906_v50  ;;  %v1833_v50 = vld [vmem:[#allocation2 + $0x16] sm:$0xff] }
  0x47   : > { %2573 = vmatmul.mubr.msk.f32.gmra.mxu0 %vm319_vm0, %v1076_v14  ;;  %2590 = vmatpush3.msra.mxu1 %v2246_v12 }
  0x48   : > { %2549 = vmatprep.mubr.msk.f32.mxu1 %vm319_vm0, %v2918_v54  ;;  %2575 = vmatprep.mubr.msk.f32.mxu0 %vm319_vm0, %v1077_v15  ;;  %v1835_v54 = vld [vmem:[#allocation2 + $0x26] sm:$0xff] }
  0x49   : > { %2616 = vmatpush3.msra.mxu0 %v2262_v13  ;;  %2591 = vmatprep.subr.mxu1 %v2245_v16 }
  0x4a   : > { %2617 = vmatprep.subr.mxu0 %v2261_v17  ;;  %2550 = vmatmul.mubr.msk.f32.gmra.mxu1 %vm319_vm0, %v2922_v56  ;;  %v1836_v56 = vld [vmem:[#allocation2 + $0x2e] sm:$0xff] }
  0x4b   : > { %2576 = vmatmul.mubr.msk.f32.gmra.mxu0 %vm319_vm0, %v1078_v18  ;;  %2552 = vmatprep.mubr.msk.f32.mxu1 %vm319_vm0, %v2938_v61  ;;  %v1649_v61 = vld [vmem:[#allocation2 + $0x45] sm:$0xff] }
  0x4c   : > { %2578 = vmatprep.mubr.msk.f32.mxu0 %vm319_vm0, %v1079_v19  ;;  %2592 = vmatpush3.msra.mxu1 %v2245_v16 }
  0x4d   : > { %2618 = vmatpush3.msra.mxu0 %v2261_v17  ;;  %2593 = vmatprep.subr.mxu1 %v2244_v20 }
  0x4e   : > { %2619 = vmatprep.subr.mxu0 %v2260_v21  ;;  %2553 = vmatmul.mubr.msk.f32.gmra.mxu1 %vm319_vm0, %v2940_v63  ;;  %v1650_v63 = vld [vmem:[#allocation2 + $0x4d] sm:$0xff] }
  0x4f   : > { %2579 = vmatmul.mubr.msk.f32.gmra.mxu0 %vm319_vm0, %v1080_v22  ;;  %2555 = vmatprep.mubr.msk.f32.mxu1 %vm319_vm0, %v702_v3  ;;  %v1652_v3 = vld [vmem:[#allocation2 + $0x5d] sm:$0xff] }
  0x50   : > { %2581 = vmatprep.mubr.msk.f32.mxu0 %vm319_vm0, %v1081_v23  ;;  %2594 = vmatpush3.msra.mxu1 %v2244_v20 }
  0x51   : > { %2620 = vmatpush3.msra.mxu0 %v2260_v21  ;;  %2639 = vmatprep.subr.mxu1 %v2279_v24 }
  0x52   : > { %2665 = vmatprep.subr.mxu0 %v2295_v25  ;;  %2556 = vmatmul.mubr.msk.f32.gmra.mxu1 %vm319_vm0, %v2954_v5  ;;  %v1653_v5 = vld [vmem:[#allocation2 + $0x65] sm:$0xff] }
  0x53   : > { %2582 = vmatmul.mubr.msk.f32.gmra.mxu0 %vm319_vm0, %v1082_v26  ;;  %2558 = vmatprep.mubr.msk.f32.mxu1 %vm319_vm0, %v704_v8  ;;  %v1844_v8 = vld [vmem:[#allocation2 + $0x6e] sm:$0xff] }
  0x54   : > { %2584 = vmatprep.mubr.msk.f32.mxu0 %vm319_vm0, %v1083_v27 }
  0x56   : > { %2559 = vmatmul.mubr.msk.f32.gmra.mxu1 %vm319_vm0, %v894_v28 }
  0x57   : > { %2585 = vmatmul.mubr.msk.f32.gmra.mxu0 %vm319_vm0, %v1084_v29  ;;  %2595 = vmatprep.mubr.msk.f32.mxu1 %vm319_vm0, %v1263_v30 }
  0x58   : > { %2621 = vmatprep.mubr.msk.f32.mxu0 %vm319_vm0, %v1453_v31 }
  0x5a   : > { %2596 = vmatmul.mubr.msk.f32.vlgmr.msra.gmra.mxu1 %vm319_vm0, %v1453_v31 }
  0x5b   : > { %2622 = vmatmul.mubr.msk.f32.vlgmr.msra.gmra.mxu0 %vm319_vm0, %v1454_v32  ;;  %2640 = vmatpush3.msra.mxu1 %v2279_v24 }
  0x5c   : > { %2666 = vmatpush3.msra.mxu0 %v2295_v25  ;;  %2598 = vmatprep.mubr.msk.f32.mxu1 %vm319_vm0, %v1454_v32 }
  0x5d   : > { %2624 = vmatprep.mubr.msk.f32.mxu0 %vm319_vm0, %v1455_v33  ;;  %2641 = vmatprep.subr.mxu1 %v2278_v34 }
  0x5e   : > { %2667 = vmatprep.subr.mxu0 %v2294_v35  ;;  %2599 = vmatmul.mubr.msk.f32.gmra.mxu1 %vm319_vm0, %v1455_v33 }
  0x5f   : > { %2625 = vmatmul.mubr.msk.f32.gmra.mxu0 %vm319_vm0, %v1456_v36  ;;  %2642 = vmatpush3.msra.mxu1 %v2278_v34 }
  0x60   : > { %2601 = vmatprep.mubr.msk.f32.mxu1 %vm319_vm0, %v1456_v36  ;;  %2627 = vmatprep.mubr.msk.f32.mxu0 %vm319_vm0, %v1457_v37 }
  0x61   : > { %2668 = vmatpush3.msra.mxu0 %v2294_v35  ;;  %2643 = vmatprep.subr.mxu1 %v2277_v38 }
  0x62   : > { %2669 = vmatprep.subr.mxu0 %v2293_v39  ;;  %2602 = vmatmul.mubr.msk.f32.gmra.mxu1 %vm319_vm0, %v1457_v37 }
  0x63   : > { %2628 = vmatmul.mubr.msk.f32.gmra.mxu0 %vm319_vm0, %v1458_v40  ;;  %2604 = vmatprep.mubr.msk.f32.mxu1 %vm319_vm0, %v1458_v40 }
  0x64   : > { %2630 = vmatprep.mubr.msk.f32.mxu0 %vm319_vm0, %v1459_v41  ;;  %2644 = vmatpush3.msra.mxu1 %v2277_v38 }
  0x65   : > { %2670 = vmatpush3.msra.mxu0 %v2293_v39  ;;  %2645 = vmatprep.subr.mxu1 %v2276_v42 }
  0x66   : > { %2671 = vmatprep.subr.mxu0 %v2292_v43  ;;  %2605 = vmatmul.mubr.msk.f32.gmra.mxu1 %vm319_vm0, %v1459_v41 }
  0x67   : > { %2631 = vmatmul.mubr.msk.f32.gmra.mxu0 %vm319_vm0, %v1460_v44  ;;  %2607 = vmatprep.mubr.msk.f32.mxu1 %vm319_vm0, %v1460_v44 }
  0x68   : > { %2633 = vmatprep.mubr.msk.f32.mxu0 %vm319_vm0, %v1461_v45  ;;  %2646 = vmatpush3.msra.mxu1 %v2276_v42 }
  0x69   : > { %2672 = vmatpush3.msra.mxu0 %v2292_v43 }
  0x6a   : > { %2608 = vmatmul.mubr.msk.f32.gmra.mxu1 %vm319_vm0, %v1461_v45 }
  0x6b   : > { %2634 = vmatmul.mubr.msk.f32.gmra.mxu0 %vm319_vm0, %v1462_v46  ;;  %2610 = vmatprep.mubr.msk.f32.mxu1 %vm319_vm0, %v1462_v46 }
  0x6c   : > { %2636 = vmatprep.mubr.msk.f32.mxu0 %vm319_vm0, %v1463_v47 }
  0x6e   : > { %2611 = vmatmul.mubr.msk.f32.gmra.mxu1 %vm319_vm0, %v1463_v47 }
  0x6f   : > { %2637 = vmatmul.mubr.msk.f32.gmra.mxu0 %vm319_vm0, %v1464_v48  ;;  %2647 = vmatprep.mubr.msk.f32.mxu1 %vm319_vm0, %v1643_v49 }
  0x70   : > { %2673 = vmatprep.mubr.msk.f32.mxu0 %vm319_vm0, %v1833_v50 }
  0x72   : > { %2648 = vmatmul.mubr.msk.f32.vlgmr.msra.gmra.mxu1 %vm319_vm0, %v1644_v51 }
  0x73   : > { %2674 = vmatmul.mubr.msk.f32.vlgmr.msra.gmra.mxu0 %vm319_vm0, %v1834_v52  ;;  %2650 = vmatprep.mubr.msk.f32.mxu1 %vm319_vm0, %v1645_v53 }
  0x74   : > { %2676 = vmatprep.mubr.msk.f32.mxu0 %vm319_vm0, %v1835_v54 }
  0x76   : > { %2651 = vmatmul.mubr.msk.f32.gmra.mxu1 %vm319_vm0, %v1646_v55 }
  0x77   : > { %2677 = vmatmul.mubr.msk.f32.gmra.mxu0 %vm319_vm0, %v1836_v56  ;;  %2653 = vmatprep.mubr.msk.f32.mxu1 %vm319_vm0, %v1647_v57 }
  0x78   : > { %2679 = vmatprep.mubr.msk.f32.mxu0 %vm319_vm0, %v1837_v58 }
  0x7a   : > { %2654 = vmatmul.mubr.msk.f32.gmra.mxu1 %vm319_vm0, %v1648_v59 }
  0x7b   : > { %2680 = vmatmul.mubr.msk.f32.gmra.mxu0 %vm319_vm0, %v1838_v60  ;;  %2656 = vmatprep.mubr.msk.f32.mxu1 %vm319_vm0, %v1649_v61 }
  0x7c   : > { %2682 = vmatprep.mubr.msk.f32.mxu0 %vm319_vm0, %v1839_v62 }
  0x7e   : > { %2657 = vmatmul.mubr.msk.f32.gmra.mxu1 %vm319_vm0, %v1650_v63 }
  0x7f   : > { %2683 = vmatmul.mubr.msk.f32.gmra.mxu0 %vm319_vm0, %v1840_v0  ;;  %2659 = vmatprep.mubr.msk.f32.mxu1 %vm319_vm0, %v1651_v1 }
  0x80   : > { %2685 = vmatprep.mubr.msk.f32.mxu0 %vm319_vm0, %v1841_v2 }
  0x82   : > { %2660 = vmatmul.mubr.msk.f32.gmra.mxu1 %vm319_vm0, %v1652_v3 }
  0x83   : > { %2686 = vmatmul.mubr.msk.f32.gmra.mxu0 %vm319_vm0, %v1842_v4  ;;  %2662 = vmatprep.mubr.msk.f32.mxu1 %vm319_vm0, %v1653_v5 }
  0x84   : > { %2688 = vmatprep.mubr.msk.f32.mxu0 %vm319_vm0, %v1843_v6 }
  0x86   : > { %2663 = vmatmul.mubr.msk.f32.gmra.mxu1 %vm319_vm0, %v1654_v7 }
  0x87   : > { %2689 = vmatmul.mubr.msk.f32.gmra.mxu0 %vm319_vm0, %v1844_v8 }
  0xdd   : > { %v3089_v9 = vpop.f32.mrf.mxu0  ;;  %v3091_v10 = vpop.f32.mrf.mxu1 }
  0xdf   : > { %v3093_v11 = vpop.f32.mrf.mxu0  ;;  %v3095_v12 = vpop.f32.mrf.mxu1 }
  0xe1   : > { %v3097_v13 = vpop.f32.mrf.mxu0  ;;  %v3099_v14 = vpop.f32.mrf.mxu1 }
  0xe3   : > { %v3101_v15 = vpop.f32.mrf.mxu0  ;;  %v3103_v16 = vpop.f32.mrf.mxu1 }
  0xe5   : > { %v3105_v17 = vpop.f32.mrf.mxu0 }
  0xe6   : > { %v3107_v18 = vpop.f32.mrf.mxu1 }
  0xe7   : > { %v3109_v19 = vpop.f32.mrf.mxu0 }
  0xe8   : > { %v3111_v20 = vpop.f32.mrf.mxu1 }
  0xe9   : > { %3339 = vst [vmem:[#allocation3_spill] sm:$0xff] %v3111_v20 }
  0xea   : > { %v2493_v21 = vpop.f32.mrf.mxu1 }
  0xeb   : > { %v2519_v22 = vpop.f32.mrf.mxu0 }
  0xec   : > { %v634_v23 = vpop.f32.mrf.mxu1 }
  0xed   : > { %v3113_v24 = vpop.f32.mrf.mxu0 }
  0xee   : > { %v2496_v25 = vpop.f32.mrf.mxu1 }
  0xef   : > { %v3115_v26 = vpop.f32.mrf.mxu0 }
  0xf0   : > { %v644_v27 = vpop.f32.mrf.mxu1 }
  0xf1   : > { %v3117_v28 = vpop.f32.mrf.mxu0 }
  0xf2   : > { %v2499_v29 = vpop.f32.mrf.mxu1 }
  0xf3   : > { %v3119_v30 = vpop.f32.mrf.mxu0 }
  0xf4   : > { %v3121_v31 = vpop.f32.mrf.mxu1 }
  0xf5   : > { %v3123_v32 = vpop.f32.mrf.mxu0 }
  0xf6   : > { %v3125_v33 = vpop.f32.mrf.mxu1 }
  0xf7   : > { %v3127_v34 = vpop.f32.mrf.mxu0 }
  0xf8   : > { %v3129_v35 = vpop.f32.mrf.mxu1 }
  0xf9   : > { %v3131_v36 = vpop.f32.mrf.mxu0 }
  0xfa   : > { %v3133_v37 = vpop.f32.mrf.mxu1 }
  0xfb   : > { %v3135_v38 = vpop.f32.mrf.mxu0 }
  0xfc   : > { %v3137_v39 = vpop.f32.mrf.mxu1 }
  0xfd   : > { %v3139_v40 = vpop.f32.mrf.mxu0 }
  0xfe   : > { %v3141_v41 = vpop.f32.mrf.mxu1 }
  0xff   : > { %v3143_v42 = vpop.f32.mrf.mxu0 }
 0x100   : > { %3340 = vst [vmem:[#allocation4_spill] sm:$0xff] %v3143_v42  ;;  %v3145_v43 = vpop.f32.mrf.mxu1 }
 0x101   : > { %3341 = vst [vmem:[#allocation5_spill] sm:$0xff] %v3145_v43  ;;  %v3147_v44 = vpop.f32.mrf.mxu0 }
 0x102   : > { %3342 = vst [vmem:[#allocation6_spill] sm:$0xff] %v3147_v44  ;;  %v2545_v45 = vpop.f32.mrf.mxu1 }
 0x103   : > { %v2571_v46 = vpop.f32.mrf.mxu0 }
 0x104   : > { %v1002_v47 = vpop.f32.mrf.mxu1 }
 0x105   : > { %v1192_v48 = vpop.f32.mrf.mxu0 }
 0x106   : > { %v2548_v49 = vpop.f32.mrf.mxu1 }
 0x107   : > { %v3149_v50 = vpop.f32.mrf.mxu0 }
 0x108   : > { %v1012_v51 = vpop.f32.mrf.mxu1 }
 0x109   : > { %v3151_v52 = vpop.f32.mrf.mxu0 }
 0x10a   : > { %v2551_v53 = vpop.f32.mrf.mxu1 }
 0x10b   : > { %v3153_v54 = vpop.f32.mrf.mxu0 }
 0x10c   : > { %v1022_v55 = vpop.f32.mrf.mxu1 }
 0x10d   : > { %v3155_v56 = vpop.f32.mrf.mxu0 }
 0x10e   : > { %v3157_v57 = vpop.f32.mrf.mxu1 }
 0x10f   : > { %v3159_v58 = vpop.f32.mrf.mxu0 }
 0x110   : > { %3343 = vst [vmem:[#allocation7_spill] sm:$0xff] %v3159_v58  ;;  %v3161_v59 = vpop.f32.mrf.mxu1  ;;  %v650_v58 = vadd.f32 %v2496_v25, %v3097_v13  ;;  %v655_v13 = vadd.f32 %v3121_v31, %v3109_v19 }
 0x111   : > { %v3163_v60 = vpop.f32.mrf.mxu0 }
 0x112   : > { %3344 = vst [vmem:[#allocation8_spill] sm:$0xff] %v3163_v60  ;;  %v3165_v61 = vpop.f32.mrf.mxu1  ;;  %v875_v31 = vadd.f32 %v3123_v32, %v655_v13 }
 0x113   : > { %3345 = vst [vmem:[#allocation9_spill] sm:$0xff] %v3165_v61  ;;  %v3167_v62 = vpop.f32.mrf.mxu0 }
 0x114   : > { %3346 = vst [vmem:[#allocation10_spill] sm:$0xff] %v3167_v62  ;;  %v3169_v63 = vpop.f32.mrf.mxu1 }
 0x115   : > { %3347 = vst [vmem:[#allocation11_spill] sm:$0xff] %v3169_v63  ;;  %v3171_v0 = vpop.f32.mrf.mxu0 }
 0x116   : > { %3348 = vst [vmem:[#allocation12_spill] sm:$0xff] %v3171_v0  ;;  %v3173_v1 = vpop.f32.mrf.mxu1  ;;  %v640_v0 = vadd.f32 %v2493_v21, %v3089_v9  ;;  %v645_v9 = vadd.f32 %v644_v27, %v3101_v15 }
 0x117   : > { %3349 = vst [vmem:[#allocation13_spill] sm:$0xff] %v3173_v1  ;;  %v3175_v2 = vpop.f32.mrf.mxu0 }
 0x118   : > { %3350 = vst [vmem:[#allocation14_spill] sm:$0xff] %v3175_v2  ;;  %v3177_v3 = vpop.f32.mrf.mxu1  ;;  %v635_v2 = vadd.f32 %v634_v23, %v3093_v11  ;;  %v872_v61 = vadd.f32 %v2519_v22, %v640_v0  ;;  %v874_v23 = vadd.f32 %v3115_v26, %v650_v58  ;;  %v665_v58 = vadd.f32 %v3129_v35, %v3095_v12 }
 0x119   : > { %3351 = vst [vmem:[#allocation15_spill] sm:$0xff] %v3177_v3  ;;  %v3179_v4 = vpop.f32.mrf.mxu0  ;;  %v675_v12 = vadd.f32 %v3137_v39, %v3103_v16  ;;  %v690_v16 = vadd.f32 %v3141_v41, %v3107_v18  ;;  %v3358_v18 = vld [vmem:[#allocation5_spill] sm:$0xff] }
 0x11a   : > { %3352 = vst [vmem:[#allocation16_spill] sm:$0xff] %v3179_v4  ;;  %v2597_v5 = vpop.f32.mrf.mxu1  ;;  %v1062_v21 = vadd.f32 %v2545_v45, %v872_v61  ;;  %v1064_v27 = vadd.f32 %v2548_v49, %v874_v23  ;;  %v3357_v23 = vld [vmem:[#allocation3_spill] sm:$0xff] }
 0x11b   : > { %v2623_v6 = vpop.f32.mrf.mxu0  ;;  %v685_v41 = vadd.f32 %v3358_v18, %v3357_v23 }
 0x11c   : > { %v1382_v7 = vpop.f32.mrf.mxu1  ;;  %v1252_v15 = vadd.f32 %v2571_v46, %v1062_v21 }
 0x11d   : > { %v1572_v8 = vpop.f32.mrf.mxu0 }
 0x11e   : > { %v2600_v44 = vpop.f32.mrf.mxu1  ;;  %v1442_v19 = vadd.f32 %v2597_v5, %v1252_v15 }
 0x11f   : > { %v3181_v60 = vpop.f32.mrf.mxu0  ;;  %v3371_v23 = vld [vmem:[#allocation14_spill] sm:$0xff] }
 0x120   : > { %3353 = vst [vmem:[#allocation17_spill] sm:$0xff] %v3181_v60  ;;  %v1392_v62 = vpop.f32.mrf.mxu1 }
 0x121   : > { %v3183_v42 = vpop.f32.mrf.mxu0 }
 0x122   : > { %3354 = vst [vmem:[#allocation18_spill] sm:$0xff] %v3183_v42  ;;  %v2603_v63 = vpop.f32.mrf.mxu1  ;;  %v871_v42 = vadd.f32 %v3113_v24, %v635_v2  ;;  %v873_v24 = vadd.f32 %v3117_v28, %v645_v9  ;;  %v877_v2 = vadd.f32 %v3131_v36, %v665_v58 }
 0x123   : > { %v3186_v1 = vpop.f32.mrf.mxu0 }
 0x124   : > { %3355 = vst [vmem:[#allocation19_spill] sm:$0xff] %v3186_v1  ;;  %v3189_v3 = vpop.f32.mrf.mxu1  ;;  %v660_v1 = vadd.f32 %v2499_v29, %v3105_v17  ;;  %v1061_v22 = vadd.f32 %v1002_v47, %v871_v42  ;;  %v670_v29 = vadd.f32 %v3125_v33, %v3091_v10  ;;  %v1063_v47 = vadd.f32 %v1012_v51, %v873_v24 }
 0x125   : > { %v3191_v4 = vpop.f32.mrf.mxu0  ;;  %v680_v10 = vadd.f32 %v3133_v37, %v3099_v14  ;;  %v1065_v51 = vadd.f32 %v1022_v55, %v875_v31  ;;  %v1067_v36 = vadd.f32 %v3161_v59, %v877_v2  ;;  %v3360_v59 = vld [vmem:[#allocation9_spill] sm:$0xff]  ;;  %v3363_v31 = vld [vmem:[#allocation8_spill] sm:$0xff] }
 0x126   : > { %v3194_v43 = vpop.f32.mrf.mxu1  ;;  %v876_v17 = vadd.f32 %v3119_v30, %v660_v1  ;;  %v1251_v42 = vadd.f32 %v1192_v48, %v1061_v22  ;;  %v1254_v30 = vadd.f32 %v3149_v50, %v1064_v27  ;;  %v878_v48 = vadd.f32 %v3127_v34, %v670_v29 }
 0x127   : > { %v3196_v20 = vpop.f32.mrf.mxu0  ;;  %v1253_v35 = vadd.f32 %v3151_v52, %v1063_v47  ;;  %v880_v55 = vadd.f32 %v3135_v38, %v680_v10  ;;  %v1255_v39 = vadd.f32 %v3155_v56, %v1065_v51  ;;  %v3250_v52 = vld [vmem:[%s3337_s3] ss:$0 sm:$0xff]  ;;  %v879_v38 = vadd.f32 %v3139_v40, %v675_v12  ;;  %v3359_v56 = vld [vmem:[#allocation7_spill] sm:$0xff] }
 0x128   : > { %v3201_v60 = vpop.f32.mrf.mxu1  ;;  %v1066_v28 = vadd.f32 %v2551_v53, %v876_v17  ;;  %v1441_v33 = vadd.f32 %v1382_v7, %v1251_v42  ;;  %v1632_v53 = vadd.f32 %v2623_v6, %v1442_v19  ;;  %v1444_v1 = vadd.f32 %v2600_v44, %v1254_v30  ;;  %v3356_v6 = vld [vmem:[#allocation17_spill] sm:$0xff]  ;;  %v3362_v47 = vld [vmem:[#allocation4_spill] sm:$0xff] }
 0x129   : > { %v3203_v11 = vpop.f32.mrf.mxu0  ;;  %v1068_v37 = vadd.f32 %v3157_v57, %v878_v48  ;;  %v1443_v7 = vadd.f32 %v1392_v62, %v1253_v35  ;;  %v1445_v13 = vadd.f32 %v3189_v3, %v1255_v39  ;;  %v3361_v15 = vld [vmem:[#allocation18_spill] sm:$0xff]  ;;  %v882_v19 = vadd.f32 %v3362_v47, %v690_v16 }
 0x12a   : > { %v3208_v25 = vpop.f32.mrf.mxu1  ;;  %v1256_v14 = vadd.f32 %v3153_v54, %v1066_v28  ;;  %v1631_v5 = vadd.f32 %v1572_v8, %v1441_v33  ;;  %v1634_v62 = vadd.f32 %v3356_v6, %v1444_v1  ;;  %v1257_v58 = vadd.f32 %v3363_v31, %v1067_v36  ;;  %v3364_v28 = vld [vmem:[#allocation11_spill] sm:$0xff]  ;;  %v3366_v1 = vld [vmem:[#allocation6_spill] sm:$0xff]  ;;  %v3369_v36 = vld [vmem:[#allocation12_spill] sm:$0xff] }
 0x12b   : > { %v3210_v0 = vpop.f32.mrf.mxu0  ;;  %v1258_v22 = vadd.f32 %v3359_v56, %v1068_v37  ;;  %v1633_v27 = vadd.f32 %v3361_v15, %v1443_v7  ;;  %v1069_v3 = vadd.f32 %v3364_v28, %v879_v38  ;;  %v3365_v10 = vld [vmem:[#allocation19_spill] sm:$0xff]  ;;  %v881_v2 = vadd.f32 %v3366_v1, %v685_v41 }
 0x12c   : > { %v3216_v45 = vpop.f32.mrf.mxu1  ;;  %v1446_v44 = vadd.f32 %v2603_v63, %v1256_v14  ;;  %v1070_v63 = vadd.f32 %v3360_v59, %v880_v55  ;;  %v3367_v14 = vld [vmem:[#allocation10_spill] sm:$0xff]  ;;  %v1635_v55 = vadd.f32 %v3191_v4, %v1445_v13  ;;  %v3372_v13 = vld [vmem:[#allocation16_spill] sm:$0xff] }
 0x12d   : > { %v3218_v26 = vpop.f32.mrf.mxu0  ;;  %v1448_v51 = vadd.f32 %v3194_v43, %v1258_v22 }
 0x12e   : > { %v3223_v46 = vpop.f32.mrf.mxu1  ;;  %v1636_v30 = vadd.f32 %v3365_v10, %v1446_v44  ;;  %v1260_v37 = vadd.f32 %v3367_v14, %v1070_v63  ;;  %v1259_v44 = vadd.f32 %v3369_v36, %v1069_v3 }
 0x12f   : > { %v3225_v49 = vpop.f32.mrf.mxu0  ;;  %v1638_v4 = vadd.f32 %v3196_v20, %v1448_v51 }
 0x130   : > { %v3231_v61 = vpop.f32.mrf.mxu1  ;;  %v1450_v38 = vadd.f32 %v3208_v25, %v1260_v37  ;;  %v1449_v41 = vadd.f32 %v3216_v45, %v1259_v44 }
 0x131   : > { %v3233_v32 = vpop.f32.mrf.mxu0 }
 0x132   : > { %v2649_v50 = vpop.f32.mrf.mxu1 }
 0x133   : > { %v2675_v34 = vpop.f32.mrf.mxu0  ;;  %v1822_v9 = vadd.f32 %v2649_v50, %v1632_v53  ;;  %v3368_v50 = vld [vmem:[#allocation13_spill] sm:$0xff] }
 0x134   : > { %v1762_v54 = vpop.f32.mrf.mxu1 }
 0x135   : > { %v1952_v57 = vpop.f32.mrf.mxu0  ;;  %v2012_v8 = vadd.f32 %v2675_v34, %v1822_v9  ;;  %v1821_v21 = vadd.f32 %v1762_v54, %v1631_v5  ;;  %v1072_v34 = vadd.f32 %v3368_v50, %v882_v19  ;;  %v1447_v9 = vadd.f32 %v3201_v60, %v1257_v58  ;;  %v3370_v54 = vld [vmem:[#allocation15_spill] sm:$0xff] }
 0x136   : > { %v2652_v40 = vpop.f32.mrf.mxu1 }
 0x137   : > { %v2678_v24 = vpop.f32.mrf.mxu0  ;;  %v2031_v17 = vadd.f32 %v3250_v52, %v2012_v8  ;;  %v2011_v29 = vadd.f32 %v1952_v57, %v1821_v21  ;;  %v1824_v42 = vadd.f32 %v2652_v40, %v1634_v62  ;;  %v1071_v57 = vadd.f32 %v3370_v54, %v881_v2 }
 0x138   : > { %v1772_v33 = vpop.f32.mrf.mxu1  ;;  %v1262_v18 = vadd.f32 %v3371_v23, %v1072_v34  ;;  %v1637_v59 = vadd.f32 %v3203_v11, %v1447_v9 }
 0x139   : > { %v1962_v48 = vpop.f32.mrf.mxu0  ;;  %2044 = vst.msk [vmem:[%s3262_s11 + $0x8] sm:$0xff] %vm2042_vm1, %v2031_v17  ;;  %v2030_v12 = vadd.f32 %v3250_v52, %v2011_v29  ;;  %v2014_v35 = vadd.f32 %v2678_v24, %v1824_v42  ;;  %v1823_v53 = vadd.f32 %v1772_v33, %v1633_v27  ;;  %v1261_v40 = vadd.f32 %v3372_v13, %v1071_v57 }
 0x13a   : > { %v2655_v5 = vpop.f32.mrf.mxu1  ;;  %v1640_v24 = vadd.f32 %v3210_v0, %v1450_v38  ;;  %v1452_v17 = vadd.f32 %v3223_v46, %v1262_v18  ;;  %v1639_v42 = vadd.f32 %v3218_v26, %v1449_v41 }
 0x13b   : > { %v2681_v7 = vpop.f32.mrf.mxu0  ;;  %2043 = vst.msk [vmem:[%s3262_s11] sm:$0xff] %vm2042_vm1, %v2030_v12  ;;  %v2033_v43 = vadd.f32 %v3250_v52, %v2014_v35  ;;  %v2013_v16 = vadd.f32 %v1962_v48, %v1823_v53  ;;  %v1826_v39 = vadd.f32 %v2655_v5, %v1636_v30  ;;  %v1451_v31 = vadd.f32 %v3231_v61, %v1261_v40 }
 0x13c   : > { %v1782_v6 = vpop.f32.mrf.mxu1  ;;  %v1642_v10 = vadd.f32 %v3225_v49, %v1452_v17 }
 0x13d   : > { %v1972_v62 = vpop.f32.mrf.mxu0  ;;  %2046 = vst.msk [vmem:[%s3262_s11 + $0x18] sm:$0xff] %vm2042_vm1, %v2033_v43  ;;  %v2032_v60 = vadd.f32 %v3250_v52, %v2013_v16  ;;  %v2016_v8 = vadd.f32 %v2681_v7, %v1826_v39  ;;  %v1825_v21 = vadd.f32 %v1782_v6, %v1635_v55  ;;  %v1641_v51 = vadd.f32 %v3233_v32, %v1451_v31 }
 0x13e   : > { %v2658_v56 = vpop.f32.mrf.mxu1 }
 0x13f   : > { %v2684_v22 = vpop.f32.mrf.mxu0  ;;  %2045 = vst.msk [vmem:[%s3262_s11 + $0x10] sm:$0xff] %vm2042_vm1, %v2032_v60  ;;  %v2035_v25 = vadd.f32 %v3250_v52, %v2016_v8  ;;  %v2015_v20 = vadd.f32 %v1972_v62, %v1825_v21  ;;  %v1828_v63 = vadd.f32 %v2658_v56, %v1638_v4 }
 0x140   : > { %v1792_v15 = vpop.f32.mrf.mxu1 }
 0x141   : > { %v1982_v27 = vpop.f32.mrf.mxu0  ;;  %2048 = vst.msk [vmem:[%s3262_s11 + $0x28] sm:$0xff] %vm2042_vm1, %v2035_v25  ;;  %v2034_v11 = vadd.f32 %v3250_v52, %v2015_v20  ;;  %v2018_v45 = vadd.f32 %v2684_v22, %v1828_v63  ;;  %v1827_v29 = vadd.f32 %v1792_v15, %v1637_v59 }
 0x142   : > { %v2661_v47 = vpop.f32.mrf.mxu1 }
 0x143   : > { %v2687_v19 = vpop.f32.mrf.mxu0  ;;  %2047 = vst.msk [vmem:[%s3262_s11 + $0x20] sm:$0xff] %vm2042_vm1, %v2034_v11  ;;  %v2037_v0 = vadd.f32 %v3250_v52, %v2018_v45  ;;  %v2017_v58 = vadd.f32 %v1982_v27, %v1827_v29  ;;  %v1830_v46 = vadd.f32 %v2661_v47, %v1640_v24 }
 0x144   : > { %v1802_v28 = vpop.f32.mrf.mxu1 }
 0x145   : > { %v1992_v3 = vpop.f32.mrf.mxu0  ;;  %2050 = vst.msk [vmem:[%s3262_s11 + $0x38] sm:$0xff] %vm2042_vm1, %v2037_v0  ;;  %v2036_v26 = vadd.f32 %v3250_v52, %v2017_v58  ;;  %v2020_v30 = vadd.f32 %v2687_v19, %v1830_v46  ;;  %v1829_v33 = vadd.f32 %v1802_v28, %v1639_v42 }
 0x146   : > { %v2664_v48 = vpop.f32.mrf.mxu1 }
 0x147   : > { %v2690_v61 = vpop.f32.mrf.mxu0  ;;  %2049 = vst.msk [vmem:[%s3262_s11 + $0x30] sm:$0xff] %vm2042_vm1, %v2036_v26  ;;  %v2039_v12 = vadd.f32 %v3250_v52, %v2020_v30  ;;  %v2019_v35 = vadd.f32 %v1992_v3, %v1829_v33  ;;  %v1832_v53 = vadd.f32 %v2664_v48, %v1642_v10 }
 0x148   : > { %v1812_v49 = vpop.f32.mrf.mxu1 }
 0x149   : > { %2052 = vst.msk [vmem:[%s3262_s11 + $0x48] sm:$0xff] %vm2042_vm1, %v2039_v12  ;;  %v2038_v1 = vadd.f32 %v3250_v52, %v2019_v35  ;;  %v2022_v2 = vadd.f32 %v2690_v61, %v1832_v53  ;;  %v1831_v14 = vadd.f32 %v1812_v49, %v1641_v51  ;;  %v2002_v37 = vpop.f32.mrf.mxu0 }
 0x14b   : > { %2051 = vst.msk [vmem:[%s3262_s11 + $0x40] sm:$0xff] %vm2042_vm1, %v2038_v1  ;;  %v2041_v50 = vadd.f32 %v3250_v52, %v2022_v2  ;;  %v2021_v32 = vadd.f32 %v2002_v37, %v1831_v14 }
 0x14d   : > { %2054 = vst.msk [vmem:[%s3262_s11 + $0x58] sm:$0xff] %vm2042_vm1, %v2041_v50  ;;  %v2040_v34 = vadd.f32 %v3250_v52, %v2021_v32 }
 0x14f   : > { %2053 = vst.msk [vmem:[%s3262_s11 + $0x50] sm:$0xff] %vm2042_vm1, %v2040_v34 }
 0x150 PF: > { %s14_s17 = sadd.s32 1, %s2749_s17   ;;  %s3373_s15 = smov %s2745_s16 }
 0x151   : > { %p11_p5 = scmp.ge.s32.totalorder %s14_s17, 4   ;;  %s3374_s16 = smov %s3376_s18 }
 0x153   :  { %13 = sbr.rel (!%p11_p5) target bundleno = 2 (0x2), region = 77 }

</bundles_post_ra>
